<compile_context>
chip_gen: v7x
topology: tpu7x:2x2x1
jax: 0.10.0
libtpu: 0.0.40
codegen_flags: <defaults>
</compile_context>

<pallas_src>
import functools

import jax
import jax.numpy as jnp
from jax.experimental import pallas as pl
from jax.experimental.pallas import tpu as pltpu


def _round_up(x, m):
    return (x + m - 1) // m * m


def _pad_feature_dim(d):
    """Lane-pad a feature dim; bump odd multiples of 128 (>128) up to a 256 multiple so the
    256-wide v6e/v7x MXU sees full tiles.  Zero padding keeps all math exact (see kernel)."""
    p = _round_up(d, 128)
    if p > 128 and (p // 128) % 2 == 1:
        p = _round_up(p, 256)
    return p


def ffn_kernel(x_ref, w1_ref, b1_ref, w2_ref, b2_ref, g_ref, beta_ref, o_ref, acc_ref,
               *, d_in, d_in_p):
    """One (row-tile i, hidden-chunk k) grid step.

    The hidden axis is a reduction: the second matmul accumulates into the f32 scratch;
    bias2 + residual + LayerNorm run once on the last chunk.  Padded feature columns are
    exactly zero everywhere, so the LN statistics over the padded width are corrected
    analytically in the epilogue.
    """
    k = pl.program_id(1)

    @pl.when(k == 0)
    def _init():
        acc_ref[...] = jnp.zeros_like(acc_ref)

    cdt = w1_ref.dtype                               # MXU operand dtype (f32 or bf16)
    x = x_ref[...]                                   # (tm, d_in_p), input dtype

    # w_1: Conv1d(d_in, d_hid, 1) == x @ W1[:, chunk] + b1[chunk]   (f32 accumulation on MXU)
    h = jnp.dot(x.astype(cdt), w1_ref[...], preferred_element_type=jnp.float32)
    # Fused ReLU + downcast: max(.,0) and rounding commute for non-negatives, and only the
    # half-width copy of h stays live into the second matmul (less VMEM/vreg pressure).
    h = jnp.maximum(h + b1_ref[...], 0.0).astype(cdt)          # (tm, tk)

    # w_2: Conv1d(d_hid, d_in, 1) == h @ W2[chunk, :], accumulated over hidden chunks.
    acc_ref[...] += jnp.dot(h, w2_ref[...], preferred_element_type=jnp.float32)

    @pl.when(k == pl.num_programs(1) - 1)
    def _epilogue():
        # TODO(synk): training-mode dropout (stateful PRNG mask) not implemented; eval == identity.
        y = acc_ref[...] + b2_ref[...] + x.astype(jnp.float32)  # bias2 + residual (f32)

        # LayerNorm over the real d_in features.  Padded columns of y are exactly zero
        # (zero-padded x / W2 columns / b2), so:
        #   mean = sum_full(y) / d_in                              (exact)
        #   each padded column contributes mean^2 to sum_full((y-mean)^2); subtract it.
        inv_d = 1.0 / d_in
        mean = jnp.sum(y, axis=-1, keepdims=True) * inv_d
        yc = y - mean
        pad = d_in_p - d_in
        var = (jnp.sum(yc * yc, axis=-1, keepdims=True) - pad * (mean * mean)) * inv_d
        # gamma/beta are zero on padded columns -> padded output columns are zero (sliced away).
        o_ref[...] = (yc * jax.lax.rsqrt(var + 1e-5) * g_ref[...] + beta_ref[...]
                      ).astype(o_ref.dtype)


def _vmem_bytes_estimate(tm, tk, d_in_p, in_bytes, cmp_bytes, out_bytes):
    """Pessimistic per-core VMEM footprint (assumes every operand is double-buffered)."""
    x_tile = 2 * tm * d_in_p * in_bytes              # input row tile
    o_tile = 2 * tm * d_in_p * out_bytes             # output row tile
    w = 2 * 2 * tk * d_in_p * cmp_bytes              # W1 + W2 chunks
    vecs = 2 * (tk + 3 * d_in_p) * 4                 # b1 chunk + b2/gamma/beta (always f32)
    acc = tm * d_in_p * 4                            # f32 accumulator scratch
    h = tm * tk * (4 + cmp_bytes)                    # f32 matmul result + ReLU-downcast copy
    epi = 2 * tm * d_in_p * 4                        # f32 y / centered-y epilogue temporaries
    return x_tile + o_tile + w + vecs + acc + h + epi


def _choose_tiles(T8, d_in_p, d_hid_p, in_bytes, cmp_bytes, out_bytes, budget, prefer_tm):
    def fits(tm, tk):
        return _vmem_bytes_estimate(tm, tk, d_in_p, in_bytes, cmp_bytes, out_bytes) <= budget

    tm_cands = []
    t = max(8, min(prefer_tm, T8))
    while True:
        tm_cands.append(t)
        if t <= 8:
            break
        t = max(8, _round_up(t // 2, 8))

    tk_cands = [d_hid_p]
    for c in (8192, 4096, 2048, 1024, 512, 256, 128):
        if c < d_hid_p and d_hid_p % c == 0:
            tk_cands.append(c)

    # Phase A: weights fully resident (fetched once for the whole call).  Shrink the row
    # tile, but not below 256 (keeps per-step overhead + LN epilogue amortized).
    phase_a_floor = min(tm_cands[0], 256)
    for tm in tm_cands:
        if tm < phase_a_floor:
            break
        if fits(tm, d_hid_p):
            return tm, d_hid_p

    # Phase B: chunk the hidden dim (weights streamed once per row tile).  Prefer the largest
    # row tile (fewer row tiles -> less total weight traffic), then the largest chunk.
    for tm in tm_cands:
        for tk in tk_cands:
            if fits(tm, tk):
                return tm, tk

    return tm_cands[-1], tk_cands[-1]


_SINGLE_BUFFER_MODE = None   # None = untested; set to True/False once pl.Buffered(1) support is known.


def _ffn_call(x2, w1_p, b1_p, w2_p, b2_p, g_p, be_p, *, T8, d_in, d_in_p, d_hid_p,
              tm, tk, out_dtype, vmem_limit, single_buffer):
    n_i = pl.cdiv(T8, tm)
    n_k = d_hid_p // tk
    w_invariant = (n_k == 1)     # unchunked weights have constant index maps

    def spec(shape, imap, invariant=False):
        if invariant and single_buffer:
            # Grid-invariant operand: a revolving double buffer is wasted VMEM.
            return pl.BlockSpec(shape, imap, pipeline_mode=pl.Buffered(1))
        return pl.BlockSpec(shape, imap)

    kernel = functools.partial(ffn_kernel, d_in=d_in, d_in_p=d_in_p)

    return pl.pallas_call(
        kernel,
        out_shape=jax.ShapeDtypeStruct((T8, d_in_p), out_dtype),
        grid_spec=pltpu.PrefetchScalarGridSpec(
            num_scalar_prefetch=0,
            grid=(n_i, n_k),                                                     # reduction axis last
            in_specs=[
                spec((tm, d_in_p), lambda i, k: (i, 0)),                         # x row tile
                spec((d_in_p, tk), lambda i, k: (0, k), invariant=w_invariant),  # W1 chunk
                spec((1, tk), lambda i, k: (0, k), invariant=w_invariant),       # b1 chunk
                spec((tk, d_in_p), lambda i, k: (k, 0), invariant=w_invariant),  # W2 chunk
                spec((1, d_in_p), lambda i, k: (0, 0), invariant=True),          # b2
                spec((1, d_in_p), lambda i, k: (0, 0), invariant=True),          # gamma
                spec((1, d_in_p), lambda i, k: (0, 0), invariant=True),          # beta
            ],
            out_specs=pl.BlockSpec((tm, d_in_p), lambda i, k: (i, 0)),
            scratch_shapes=[pltpu.VMEM((tm, d_in_p), jnp.float32)],
        ),
        compiler_params=pltpu.CompilerParams(
            dimension_semantics=("parallel", "arbitrary"),
            vmem_limit_bytes=vmem_limit,
        ),
    )(x2, w1_p, b1_p, w2_p, b2_p, g_p, be_p)


def positionwise_ffn(x, w1, b1, w2, b2, gamma, beta, *, matmul_dtype=None, tm=None, tk=None):
    """x: (B, L, d_in).  w1: (d_in, d_hid), w2: (d_hid, d_in).  Returns (B, L, d_in).

    matmul_dtype: operand dtype for both MXU matmuls (accumulation is always f32).  Defaults
    to x.dtype.  On the bf16-native v6e/v7x MXU, passing jnp.bfloat16 for f32 inputs trades
    bf16 operand precision for ~3x matmul rate; the f32 input path is the slow MXU path.
    """
    B, L, d_in = x.shape
    d_hid = w1.shape[1]
    T = B * L
    T8 = _round_up(T, 8)

    cmp_dtype = jnp.dtype(matmul_dtype) if matmul_dtype is not None else jnp.dtype(x.dtype)
    out_dtype = x.dtype

    d_in_p = _pad_feature_dim(d_in)
    d_hid_p = _pad_feature_dim(d_hid)

    in_bytes = jnp.dtype(x.dtype).itemsize
    cmp_bytes = cmp_dtype.itemsize
    out_bytes = jnp.dtype(out_dtype).itemsize

    # Generation-aware VMEM budget & preferred row tile (v5e/v6e: 128 MiB/core; v7x: 64 MiB/core).
    try:
        vmem_cap = int(pltpu.get_tpu_info().vmem_capacity_bytes)
    except Exception:
        vmem_cap = 64 * 1024 * 1024
    budget = int(0.65 * vmem_cap)
    big_vmem = vmem_cap >= 96 * 1024 * 1024
    if cmp_dtype == jnp.dtype(jnp.bfloat16):
        prefer_tm = 2048 if big_vmem else 512
    else:
        prefer_tm = 1024 if big_vmem else 256

    tm_auto, tk_auto = _choose_tiles(T8, d_in_p, d_hid_p, in_bytes, cmp_bytes, out_bytes,
                                     budget, prefer_tm)
    tm = tm_auto if tm is None else tm
    tm = max(8, min(_round_up(tm, 8), T8))
    tk = tk_auto if tk is None else tk
    tk = max(128, min(_round_up(tk, 128), d_hid_p))
    while d_hid_p % tk != 0:          # hidden chunks must tile d_hid_p exactly (zero-pad proof)
        tk -= 128

    est = _vmem_bytes_estimate(tm, tk, d_in_p, in_bytes, cmp_bytes, out_bytes)
    vmem_limit = int(min(max(32 * 1024 * 1024, int(1.25 * est)), int(0.92 * vmem_cap)))

    # Wrapper-side pads/slices are full HBM round trips -> skip them when shapes are aligned.
    x2 = x.reshape(T, d_in)
    if T8 != T or d_in_p != d_in:
        x2 = jnp.pad(x2, ((0, T8 - T), (0, d_in_p - d_in)))
    w1_p = w1.astype(cmp_dtype)
    w2_p = w2.astype(cmp_dtype)
    if d_in_p != d_in or d_hid_p != d_hid:
        w1_p = jnp.pad(w1_p, ((0, d_in_p - d_in), (0, d_hid_p - d_hid)))
        w2_p = jnp.pad(w2_p, ((0, d_hid_p - d_hid), (0, d_in_p - d_in)))
    b1_p = jnp.pad(b1.astype(jnp.float32), (0, d_hid_p - d_hid)).reshape(1, d_hid_p)
    b2_p = jnp.pad(b2.astype(jnp.float32), (0, d_in_p - d_in)).reshape(1, d_in_p)
    g_p = jnp.pad(gamma.astype(jnp.float32), (0, d_in_p - d_in)).reshape(1, d_in_p)
    be_p = jnp.pad(beta.astype(jnp.float32), (0, d_in_p - d_in)).reshape(1, d_in_p)

    call = functools.partial(
        _ffn_call, x2, w1_p, b1_p, w2_p, b2_p, g_p, be_p,
        T8=T8, d_in=d_in, d_in_p=d_in_p, d_hid_p=d_hid_p,
        tm=tm, tk=tk, out_dtype=out_dtype, vmem_limit=vmem_limit)

    global _SINGLE_BUFFER_MODE
    if _SINGLE_BUFFER_MODE is None:
        try:
            out = jax.block_until_ready(call(single_buffer=True))
            _SINGLE_BUFFER_MODE = True
        except Exception:
            # This JAX/Mosaic build rejects pipeline_mode=pl.Buffered(1); fall back to defaults.
            _SINGLE_BUFFER_MODE = False
            out = call(single_buffer=False)
    else:
        out = call(single_buffer=_SINGLE_BUFFER_MODE)

    if T8 != T or d_in_p != d_in:
        out = out[:T, :d_in]
    return out.reshape(B, L, d_in)


def reference_ffn(x, w1, b1, w2, b2, gamma, beta):
    """Pure-JAX f32 reference mirroring the PyTorch forward (eval mode)."""
    xf = x.astype(jnp.float32)
    h = jnp.maximum(jnp.einsum("bld,dh->blh", xf, w1.astype(jnp.float32)) + b1, 0.0)
    y = jnp.einsum("blh,hd->bld", h, w2.astype(jnp.float32)) + b2
    y = y + xf
    mean = jnp.mean(y, axis=-1, keepdims=True)
    var = jnp.mean((y - mean) ** 2, axis=-1, keepdims=True)
    return (y - mean) * jax.lax.rsqrt(var + 1e-5) * gamma + beta


def _make_params(key, B, L, d_in, d_hid, dtype):
    k1, k2, k3, k4, k5, k6, k7 = jax.random.split(key, 7)
    x = jax.random.normal(k1, (B, L, d_in), dtype=jnp.float32)
    # Conv1d(d_in, d_hid, 1) weight is (d_hid, d_in, 1); stored pre-transposed as (d_in, d_hid).
    w1 = jax.random.normal(k2, (d_in, d_hid), dtype=jnp.float32) * (1.0 / jnp.sqrt(d_in))
    b1 = jax.random.normal(k3, (d_hid,), dtype=jnp.float32) * 0.01
    w2 = jax.random.normal(k4, (d_hid, d_in), dtype=jnp.float32) * (1.0 / jnp.sqrt(d_hid))
    b2 = jax.random.normal(k5, (d_in,), dtype=jnp.float32) * 0.01
    gamma = 1.0 + 0.1 * jax.random.normal(k6, (d_in,), dtype=jnp.float32)
    beta = 0.1 * jax.random.normal(k7, (d_in,), dtype=jnp.float32)
    return (x.astype(dtype), w1.astype(dtype), b1.astype(jnp.float32),
            w2.astype(dtype), b2.astype(jnp.float32),
            gamma.astype(jnp.float32), beta.astype(jnp.float32))


if __name__ == "__main__":
    key = jax.random.PRNGKey(0)

    # 1) Small f32 case (B=2, L=8, d_in=32, d_hid=64) — features lane-padded to 128.
    x, w1, b1, w2, b2, gamma, beta = _make_params(key, 2, 8, 32, 64, jnp.float32)
    out = positionwise_ffn(x, w1, b1, w2, b2, gamma, beta)
    jax.block_until_ready(out)
    ref = reference_ffn(x, w1, b1, w2, b2, gamma, beta)
    assert out.shape == (2, 8, 32)
    assert jnp.allclose(out, ref, atol=5e-4, rtol=5e-4), "f32 mismatch vs reference"

    # 2) Ragged token count + non-128 feature dims (exercises padding / partial row tile).
    key2 = jax.random.PRNGKey(1)
    x, w1, b1, w2, b2, gamma, beta = _make_params(key2, 2, 7, 40, 96, jnp.float32)
    out = positionwise_ffn(x, w1, b1, w2, b2, gamma, beta)
    jax.block_until_ready(out)
    ref = reference_ffn(x, w1, b1, w2, b2, gamma, beta)
    assert out.shape == (2, 7, 40)
    assert jnp.allclose(out, ref, atol=5e-4, rtol=5e-4), "ragged f32 mismatch vs reference"

    # 3) bf16 inputs/weights (full-rate MXU path, f32 accumulation) — loose tolerance.
    x, w1, b1, w2, b2, gamma, beta = _make_params(key, 2, 8, 32, 64, jnp.bfloat16)
    out = positionwise_ffn(x, w1, b1, w2, b2, gamma, beta)
    jax.block_until_ready(out)
    ref = reference_ffn(x, w1, b1, w2, b2, gamma, beta)
    assert out.dtype == jnp.bfloat16
    assert jnp.allclose(out.astype(jnp.float32), ref, atol=8e-2, rtol=8e-2), \
        "bf16 mismatch vs reference"

    # 4) Forced hidden-dim chunking (d_hid_p=256, tk=128 -> 2 chunks): exercises the
    #    accumulator init / epilogue path and pipelined weight chunks.
    key3 = jax.random.PRNGKey(2)
    x, w1, b1, w2, b2, gamma, beta = _make_params(key3, 2, 9, 48, 256, jnp.float32)
    out = positionwise_ffn(x, w1, b1, w2, b2, gamma, beta, tk=128)
    jax.block_until_ready(out)
    ref = reference_ffn(x, w1, b1, w2, b2, gamma, beta)
    assert out.shape == (2, 9, 48)
    assert jnp.allclose(out, ref, atol=5e-4, rtol=5e-4), "chunked f32 mismatch vs reference"

    # 5) f32 inputs with bf16 matmul operands (fast-MXU option on v6e/v7x) — loose tolerance.
    x, w1, b1, w2, b2, gamma, beta = _make_params(key, 2, 8, 32, 64, jnp.float32)
    out = positionwise_ffn(x, w1, b1, w2, b2, gamma, beta, matmul_dtype=jnp.bfloat16)
    jax.block_until_ready(out)
    ref = reference_ffn(x, w1, b1, w2, b2, gamma, beta)
    assert out.dtype == jnp.float32
    assert jnp.allclose(out, ref, atol=8e-2, rtol=8e-2), "bf16-matmul mismatch vs reference"

    print("KERNEL_OK")
</pallas_src>

<mosaic_0001>
module attributes {stable_mosaic.version = 11 : i64} {
  func.func @ffn_kernel(%arg0: i32, %arg1: i32, %arg2: memref<16x128xf32, #tpu.memory_space<vmem>>, %arg3: memref<128x128xf32, #tpu.memory_space<vmem>>, %arg4: memref<1x128xf32, #tpu.memory_space<vmem>>, %arg5: memref<128x128xf32, #tpu.memory_space<vmem>>, %arg6: memref<1x128xf32, #tpu.memory_space<vmem>>, %arg7: memref<1x128xf32, #tpu.memory_space<vmem>>, %arg8: memref<1x128xf32, #tpu.memory_space<vmem>>, %arg9: memref<16x128xf32, #tpu.memory_space<vmem>>, %arg10: memref<16x128xf32, #tpu.memory_space<vmem>>) attributes {dimension_semantics = [#tpu.dimension_semantics<parallel>, #tpu.dimension_semantics<arbitrary>], iteration_bounds = array<i64: 1, 1>, scalar_prefetch = 0 : i64, scratch_operands = 1 : i64, tpu.core_type = #tpu.core_type<tc>, window_params = [{transform_indices = @transform_0, window_bounds = array<i64: 16, 128>}, {pipeline_mode = #tpu.pipeline_mode<synchronous>, transform_indices = @transform_1, window_bounds = array<i64: 128, 128>}, {pipeline_mode = #tpu.pipeline_mode<synchronous>, transform_indices = @transform_2, window_bounds = array<i64: 1, 128>}, {pipeline_mode = #tpu.pipeline_mode<synchronous>, transform_indices = @transform_3, window_bounds = array<i64: 128, 128>}, {pipeline_mode = #tpu.pipeline_mode<synchronous>, transform_indices = @transform_4, window_bounds = array<i64: 1, 128>}, {pipeline_mode = #tpu.pipeline_mode<synchronous>, transform_indices = @transform_5, window_bounds = array<i64: 1, 128>}, {pipeline_mode = #tpu.pipeline_mode<synchronous>, transform_indices = @transform_6, window_bounds = array<i64: 1, 128>}, {transform_indices = @transform_7, window_bounds = array<i64: 16, 128>}]} {
    %c0_i32 = arith.constant 0 : i32
    %0 = arith.cmpi eq, %arg1, %c0_i32 : i32
    %1 = arith.extui %0 : i1 to i32
    %c0_i32_0 = arith.constant 0 : i32
    %2 = arith.cmpi ne, %1, %c0_i32_0 : i32
    scf.if %2 {
      %cst_16 = arith.constant 0.000000e+00 : f32
      %19 = vector.broadcast %cst_16 : f32 to vector<16x128xf32>
      %c0_17 = arith.constant 0 : index
      %c0_18 = arith.constant 0 : index
      %20 = vector.load %arg10[%c0_17, %c0_18] : memref<16x128xf32, #tpu.memory_space<vmem>>, vector<16x128xf32>
      tpu.vector_store %arg10[%c0_17, %c0_18], %19 {strides = array<i32>} : memref<16x128xf32, #tpu.memory_space<vmem>>, vector<16x128xf32>,
    } else {
    }
    %c0 = arith.constant 0 : index
    %c0_1 = arith.constant 0 : index
    %3 = vector.load %arg2[%c0, %c0_1] : memref<16x128xf32, #tpu.memory_space<vmem>>, vector<16x128xf32>
    %c0_2 = arith.constant 0 : index
    %c0_3 = arith.constant 0 : index
    %4 = vector.load %arg3[%c0_2, %c0_3] : memref<128x128xf32, #tpu.memory_space<vmem>>, vector<128x128xf32>
    %cst = arith.constant dense<0.000000e+00> : vector<16x128xf32>
    %5 = tpu.matmul %3, %4, %cst {dimension_numbers = #tpu.dot_dimension_numbers<[1], [0], [0], [1], [0, 0, 1, 1], [], []>} : vector<16x128xf32>, vector<128x128xf32>, vector<16x128xf32> -> vector<16x128xf32>
    %c0_4 = arith.constant 0 : index
    %c0_5 = arith.constant 0 : index
    %6 = vector.load %arg4[%c0_4, %c0_5] : memref<1x128xf32, #tpu.memory_space<vmem>>, vector<1x128xf32>
    %7 = vector.broadcast %6 : vector<1x128xf32> to vector<16x128xf32>
    %8 = arith.addf %5, %7 : vector<16x128xf32>
    %cst_6 = arith.constant 0.000000e+00 : f32
    %9 = vector.broadcast %cst_6 : f32 to vector<16x128xf32>
    %10 = arith.maximumf %8, %9 : vector<16x128xf32>
    %c0_7 = arith.constant 0 : index
    %c0_8 = arith.constant 0 : index
    %11 = vector.load %arg10[%c0_7, %c0_8] : memref<16x128xf32, #tpu.memory_space<vmem>>, vector<16x128xf32>
    %c0_9 = arith.constant 0 : index
    %c0_10 = arith.constant 0 : index
    %12 = vector.load %arg5[%c0_9, %c0_10] : memref<128x128xf32, #tpu.memory_space<vmem>>, vector<128x128xf32>
    %cst_11 = arith.constant dense<0.000000e+00> : vector<16x128xf32>
    %13 = tpu.matmul %10, %12, %cst_11 {dimension_numbers = #tpu.dot_dimension_numbers<[1], [0], [0], [1], [0, 0, 1, 1], [], []>} : vector<16x128xf32>, vector<128x128xf32>, vector<16x128xf32> -> vector<16x128xf32>
    %14 = arith.addf %11, %13 : vector<16x128xf32>
    %c0_12 = arith.constant 0 : index
    %c0_13 = arith.constant 0 : index
    %15 = vector.load %arg10[%c0_12, %c0_13] : memref<16x128xf32, #tpu.memory_space<vmem>>, vector<16x128xf32>
    tpu.vector_store %arg10[%c0_12, %c0_13], %14 {strides = array<i32>} : memref<16x128xf32, #tpu.memory_space<vmem>>, vector<16x128xf32>,
    %c0_i32_14 = arith.constant 0 : i32
    %16 = arith.cmpi eq, %arg1, %c0_i32_14 : i32
    %17 = arith.extui %16 : i1 to i32
    %c0_i32_15 = arith.constant 0 : i32
    %18 = arith.cmpi ne, %17, %c0_i32_15 : i32
    scf.if %18 {
      %c0_16 = arith.constant 0 : index
      %c0_17 = arith.constant 0 : index
      %19 = vector.load %arg10[%c0_16, %c0_17] : memref<16x128xf32, #tpu.memory_space<vmem>>, vector<16x128xf32>
      %c0_18 = arith.constant 0 : index
      %c0_19 = arith.constant 0 : index
      %20 = vector.load %arg6[%c0_18, %c0_19] : memref<1x128xf32, #tpu.memory_space<vmem>>, vector<1x128xf32>
      %21 = vector.broadcast %20 : vector<1x128xf32> to vector<16x128xf32>
      %22 = arith.addf %19, %21 : vector<16x128xf32>
      %23 = arith.addf %22, %3 : vector<16x128xf32>
      %cst_20 = arith.constant dense<0.000000e+00> : vector<16xf32>
      %24 = vector.multi_reduction <add>, %23, %cst_20 [1] : vector<16x128xf32> to vector<16xf32>
      %25 = vector.shape_cast %24 : vector<16xf32> to vector<16x1xf32>
      %cst_21 = arith.constant 3.125000e-02 : f32
      %26 = vector.broadcast %cst_21 : f32 to vector<16x1xf32>
      %27 = arith.mulf %25, %26 : vector<16x1xf32>
      %28 = vector.broadcast %27 : vector<16x1xf32> to vector<16x128xf32>
      %29 = arith.subf %23, %28 : vector<16x128xf32>
      %30 = arith.mulf %29, %29 : vector<16x128xf32>
      %cst_22 = arith.constant dense<0.000000e+00> : vector<16xf32>
      %31 = vector.multi_reduction <add>, %30, %cst_22 [1] : vector<16x128xf32> to vector<16xf32>
      %32 = vector.shape_cast %31 : vector<16xf32> to vector<16x1xf32>
      %33 = arith.mulf %27, %27 : vector<16x1xf32>
      %cst_23 = arith.constant 9.600000e+01 : f32
      %34 = vector.broadcast %cst_23 : f32 to vector<16x1xf32>
      %35 = arith.mulf %34, %33 : vector<16x1xf32>
      %36 = arith.subf %32, %35 : vector<16x1xf32>
      %cst_24 = arith.constant 3.125000e-02 : f32
      %37 = vector.broadcast %cst_24 : f32 to vector<16x1xf32>
      %38 = arith.mulf %36, %37 : vector<16x1xf32>
      %cst_25 = arith.constant 9.99999974E-6 : f32
      %39 = vector.broadcast %cst_25 : f32 to vector<16x1xf32>
      %40 = arith.addf %38, %39 : vector<16x1xf32>
      %41 = math.rsqrt %40 : vector<16x1xf32>
      %42 = vector.broadcast %41 : vector<16x1xf32> to vector<16x128xf32>
      %43 = arith.mulf %29, %42 : vector<16x128xf32>
      %c0_26 = arith.constant 0 : index
      %c0_27 = arith.constant 0 : index
      %44 = vector.load %arg7[%c0_26, %c0_27] : memref<1x128xf32, #tpu.memory_space<vmem>>, vector<1x128xf32>
      %45 = vector.broadcast %44 : vector<1x128xf32> to vector<16x128xf32>
      %46 = arith.mulf %43, %45 : vector<16x128xf32>
      %c0_28 = arith.constant 0 : index
      %c0_29 = arith.constant 0 : index
      %47 = vector.load %arg8[%c0_28, %c0_29] : memref<1x128xf32, #tpu.memory_space<vmem>>, vector<1x128xf32>
      %48 = vector.broadcast %47 : vector<1x128xf32> to vector<16x128xf32>
      %49 = arith.addf %46, %48 : vector<16x128xf32>
      %c0_30 = arith.constant 0 : index
      %c0_31 = arith.constant 0 : index
      %50 = vector.load %arg9[%c0_30, %c0_31] : memref<16x128xf32, #tpu.memory_space<vmem>>, vector<16x128xf32>
      tpu.vector_store %arg9[%c0_30, %c0_31], %49 {strides = array<i32>} : memref<16x128xf32, #tpu.memory_space<vmem>>, vector<16x128xf32>,
    } else {
    }
    return
  }
  func.func @transform_0(%arg0: i32, %arg1: i32) -> (i32, i32) {
    %c0_i32 = arith.constant 0 : i32
    %c0_i32_0 = arith.constant 0 : i32
    return %arg0, %c0_i32 : i32, i32
  }
  func.func @transform_1(%arg0: i32, %arg1: i32) -> (i32, i32) {
    %c0_i32 = arith.constant 0 : i32
    %c0_i32_0 = arith.constant 0 : i32
    return %c0_i32, %arg1 : i32, i32
  }
  func.func @transform_2(%arg0: i32, %arg1: i32) -> (i32, i32) {
    %c0_i32 = arith.constant 0 : i32
    %c0_i32_0 = arith.constant 0 : i32
    return %c0_i32, %arg1 : i32, i32
  }
  func.func @transform_3(%arg0: i32, %arg1: i32) -> (i32, i32) {
    %c0_i32 = arith.constant 0 : i32
    %c0_i32_0 = arith.constant 0 : i32
    return %arg1, %c0_i32 : i32, i32
  }
  func.func @transform_4(%arg0: i32, %arg1: i32) -> (i32, i32) {
    %c0_i32 = arith.constant 0 : i32
    %c0_i32_0 = arith.constant 0 : i32
    %c0_i32_1 = arith.constant 0 : i32
    return %c0_i32, %c0_i32_0 : i32, i32
  }
  func.func @transform_5(%arg0: i32, %arg1: i32) -> (i32, i32) {
    %c0_i32 = arith.constant 0 : i32
    %c0_i32_0 = arith.constant 0 : i32
    %c0_i32_1 = arith.constant 0 : i32
    return %c0_i32, %c0_i32_0 : i32, i32
  }
  func.func @transform_6(%arg0: i32, %arg1: i32) -> (i32, i32) {
    %c0_i32 = arith.constant 0 : i32
    %c0_i32_0 = arith.constant 0 : i32
    %c0_i32_1 = arith.constant 0 : i32
    return %c0_i32, %c0_i32_0 : i32, i32
  }
  func.func @transform_7(%arg0: i32, %arg1: i32) -> (i32, i32) {
    %c0_i32 = arith.constant 0 : i32
    %c0_i32_0 = arith.constant 0 : i32
    return %arg0, %c0_i32 : i32, i32
  }
}

module attributes {stable_mosaic.version = 11 : i64} {
  func.func @ffn_kernel(%arg0: i32, %arg1: i32, %arg2: memref<16x128xf32, #tpu.memory_space<vmem>>, %arg3: memref<128x128xf32, #tpu.memory_space<vmem>>, %arg4: memref<1x128xf32, #tpu.memory_space<vmem>>, %arg5: memref<128x128xf32, #tpu.memory_space<vmem>>, %arg6: memref<1x128xf32, #tpu.memory_space<vmem>>, %arg7: memref<1x128xf32, #tpu.memory_space<vmem>>, %arg8: memref<1x128xf32, #tpu.memory_space<vmem>>, %arg9: memref<16x128xf32, #tpu.memory_space<vmem>>, %arg10: memref<16x128xf32, #tpu.memory_space<vmem>>) attributes {dimension_semantics = [#tpu.dimension_semantics<parallel>, #tpu.dimension_semantics<arbitrary>], iteration_bounds = array<i64: 1, 1>, scalar_prefetch = 0 : i64, scratch_operands = 1 : i64, tpu.core_type = #tpu.core_type<tc>, window_params = [{transform_indices = @transform_0, window_bounds = array<i64: 16, 128>}, {transform_indices = @transform_1, window_bounds = array<i64: 128, 128>}, {transform_indices = @transform_2, window_bounds = array<i64: 1, 128>}, {transform_indices = @transform_3, window_bounds = array<i64: 128, 128>}, {pipeline_mode = #tpu.pipeline_mode<synchronous>, transform_indices = @transform_4, window_bounds = array<i64: 1, 128>}, {pipeline_mode = #tpu.pipeline_mode<synchronous>, transform_indices = @transform_5, window_bounds = array<i64: 1, 128>}, {pipeline_mode = #tpu.pipeline_mode<synchronous>, transform_indices = @transform_6, window_bounds = array<i64: 1, 128>}, {transform_indices = @transform_7, window_bounds = array<i64: 16, 128>}]} {
    %c0_i32 = arith.constant 0 : i32
    %0 = arith.cmpi eq, %arg1, %c0_i32 : i32
    %1 = arith.extui %0 : i1 to i32
    %c0_i32_0 = arith.constant 0 : i32
    %2 = arith.cmpi ne, %1, %c0_i32_0 : i32
    scf.if %2 {
      %cst_16 = arith.constant 0.000000e+00 : f32
      %19 = vector.broadcast %cst_16 : f32 to vector<16x128xf32>
      %c0_17 = arith.constant 0 : index
      %c0_18 = arith.constant 0 : index
      %20 = vector.load %arg10[%c0_17, %c0_18] : memref<16x128xf32, #tpu.memory_space<vmem>>, vector<16x128xf32>
      tpu.vector_store %arg10[%c0_17, %c0_18], %19 {strides = array<i32>} : memref<16x128xf32, #tpu.memory_space<vmem>>, vector<16x128xf32>,
    } else {
    }
    %c0 = arith.constant 0 : index
    %c0_1 = arith.constant 0 : index
    %3 = vector.load %arg2[%c0, %c0_1] : memref<16x128xf32, #tpu.memory_space<vmem>>, vector<16x128xf32>
    %c0_2 = arith.constant 0 : index
    %c0_3 = arith.constant 0 : index
    %4 = vector.load %arg3[%c0_2, %c0_3] : memref<128x128xf32, #tpu.memory_space<vmem>>, vector<128x128xf32>
    %cst = arith.constant dense<0.000000e+00> : vector<16x128xf32>
    %5 = tpu.matmul %3, %4, %cst {dimension_numbers = #tpu.dot_dimension_numbers<[1], [0], [0], [1], [0, 0, 1, 1], [], []>} : vector<16x128xf32>, vector<128x128xf32>, vector<16x128xf32> -> vector<16x128xf32>
    %c0_4 = arith.constant 0 : index
    %c0_5 = arith.constant 0 : index
    %6 = vector.load %arg4[%c0_4, %c0_5] : memref<1x128xf32, #tpu.memory_space<vmem>>, vector<1x128xf32>
    %7 = vector.broadcast %6 : vector<1x128xf32> to vector<16x128xf32>
    %8 = arith.addf %5, %7 : vector<16x128xf32>
    %cst_6 = arith.constant 0.000000e+00 : f32
    %9 = vector.broadcast %cst_6 : f32 to vector<16x128xf32>
    %10 = arith.maximumf %8, %9 : vector<16x128xf32>
    %c0_7 = arith.constant 0 : index
    %c0_8 = arith.constant 0 : index
    %11 = vector.load %arg10[%c0_7, %c0_8] : memref<16x128xf32, #tpu.memory_space<vmem>>, vector<16x128xf32>
    %c0_9 = arith.constant 0 : index
    %c0_10 = arith.constant 0 : index
    %12 = vector.load %arg5[%c0_9, %c0_10] : memref<128x128xf32, #tpu.memory_space<vmem>>, vector<128x128xf32>
    %cst_11 = arith.constant dense<0.000000e+00> : vector<16x128xf32>
    %13 = tpu.matmul %10, %12, %cst_11 {dimension_numbers = #tpu.dot_dimension_numbers<[1], [0], [0], [1], [0, 0, 1, 1], [], []>} : vector<16x128xf32>, vector<128x128xf32>, vector<16x128xf32> -> vector<16x128xf32>
    %14 = arith.addf %11, %13 : vector<16x128xf32>
    %c0_12 = arith.constant 0 : index
    %c0_13 = arith.constant 0 : index
    %15 = vector.load %arg10[%c0_12, %c0_13] : memref<16x128xf32, #tpu.memory_space<vmem>>, vector<16x128xf32>
    tpu.vector_store %arg10[%c0_12, %c0_13], %14 {strides = array<i32>} : memref<16x128xf32, #tpu.memory_space<vmem>>, vector<16x128xf32>,
    %c0_i32_14 = arith.constant 0 : i32
    %16 = arith.cmpi eq, %arg1, %c0_i32_14 : i32
    %17 = arith.extui %16 : i1 to i32
    %c0_i32_15 = arith.constant 0 : i32
    %18 = arith.cmpi ne, %17, %c0_i32_15 : i32
    scf.if %18 {
      %c0_16 = arith.constant 0 : index
      %c0_17 = arith.constant 0 : index
      %19 = vector.load %arg10[%c0_16, %c0_17] : memref<16x128xf32, #tpu.memory_space<vmem>>, vector<16x128xf32>
      %c0_18 = arith.constant 0 : index
      %c0_19 = arith.constant 0 : index
      %20 = vector.load %arg6[%c0_18, %c0_19] : memref<1x128xf32, #tpu.memory_space<vmem>>, vector<1x128xf32>
      %21 = vector.broadcast %20 : vector<1x128xf32> to vector<16x128xf32>
      %22 = arith.addf %19, %21 : vector<16x128xf32>
      %23 = arith.addf %22, %3 : vector<16x128xf32>
      %cst_20 = arith.constant dense<0.000000e+00> : vector<16xf32>
      %24 = vector.multi_reduction <add>, %23, %cst_20 [1] : vector<16x128xf32> to vector<16xf32>
      %25 = vector.shape_cast %24 : vector<16xf32> to vector<16x1xf32>
      %cst_21 = arith.constant 3.125000e-02 : f32
      %26 = vector.broadcast %cst_21 : f32 to vector<16x1xf32>
      %27 = arith.mulf %25, %26 : vector<16x1xf32>
      %28 = vector.broadcast %27 : vector<16x1xf32> to vector<16x128xf32>
      %29 = arith.subf %23, %28 : vector<16x128xf32>
      %30 = arith.mulf %29, %29 : vector<16x128xf32>
      %cst_22 = arith.constant dense<0.000000e+00> : vector<16xf32>
      %31 = vector.multi_reduction <add>, %30, %cst_22 [1] : vector<16x128xf32> to vector<16xf32>
      %32 = vector.shape_cast %31 : vector<16xf32> to vector<16x1xf32>
      %33 = arith.mulf %27, %27 : vector<16x1xf32>
      %cst_23 = arith.constant 9.600000e+01 : f32
      %34 = vector.broadcast %cst_23 : f32 to vector<16x1xf32>
      %35 = arith.mulf %34, %33 : vector<16x1xf32>
      %36 = arith.subf %32, %35 : vector<16x1xf32>
      %cst_24 = arith.constant 3.125000e-02 : f32
      %37 = vector.broadcast %cst_24 : f32 to vector<16x1xf32>
      %38 = arith.mulf %36, %37 : vector<16x1xf32>
      %cst_25 = arith.constant 9.99999974E-6 : f32
      %39 = vector.broadcast %cst_25 : f32 to vector<16x1xf32>
      %40 = arith.addf %38, %39 : vector<16x1xf32>
      %41 = math.rsqrt %40 : vector<16x1xf32>
      %42 = vector.broadcast %41 : vector<16x1xf32> to vector<16x128xf32>
      %43 = arith.mulf %29, %42 : vector<16x128xf32>
      %c0_26 = arith.constant 0 : index
      %c0_27 = arith.constant 0 : index
      %44 = vector.load %arg7[%c0_26, %c0_27] : memref<1x128xf32, #tpu.memory_space<vmem>>, vector<1x128xf32>
      %45 = vector.broadcast %44 : vector<1x128xf32> to vector<16x128xf32>
      %46 = arith.mulf %43, %45 : vector<16x128xf32>
      %c0_28 = arith.constant 0 : index
      %c0_29 = arith.constant 0 : index
      %47 = vector.load %arg8[%c0_28, %c0_29] : memref<1x128xf32, #tpu.memory_space<vmem>>, vector<1x128xf32>
      %48 = vector.broadcast %47 : vector<1x128xf32> to vector<16x128xf32>
      %49 = arith.addf %46, %48 : vector<16x128xf32>
      %c0_30 = arith.constant 0 : index
      %c0_31 = arith.constant 0 : index
      %50 = vector.load %arg9[%c0_30, %c0_31] : memref<16x128xf32, #tpu.memory_space<vmem>>, vector<16x128xf32>
      tpu.vector_store %arg9[%c0_30, %c0_31], %49 {strides = array<i32>} : memref<16x128xf32, #tpu.memory_space<vmem>>, vector<16x128xf32>,
    } else {
    }
    return
  }
  func.func @transform_0(%arg0: i32, %arg1: i32) -> (i32, i32) {
    %c0_i32 = arith.constant 0 : i32
    %c0_i32_0 = arith.constant 0 : i32
    return %arg0, %c0_i32 : i32, i32
  }
  func.func @transform_1(%arg0: i32, %arg1: i32) -> (i32, i32) {
    %c0_i32 = arith.constant 0 : i32
    %c0_i32_0 = arith.constant 0 : i32
    return %c0_i32, %arg1 : i32, i32
  }
  func.func @transform_2(%arg0: i32, %arg1: i32) -> (i32, i32) {
    %c0_i32 = arith.constant 0 : i32
    %c0_i32_0 = arith.constant 0 : i32
    return %c0_i32, %arg1 : i32, i32
  }
  func.func @transform_3(%arg0: i32, %arg1: i32) -> (i32, i32) {
    %c0_i32 = arith.constant 0 : i32
    %c0_i32_0 = arith.constant 0 : i32
    return %arg1, %c0_i32 : i32, i32
  }
  func.func @transform_4(%arg0: i32, %arg1: i32) -> (i32, i32) {
    %c0_i32 = arith.constant 0 : i32
    %c0_i32_0 = arith.constant 0 : i32
    %c0_i32_1 = arith.constant 0 : i32
    return %c0_i32, %c0_i32_0 : i32, i32
  }
  func.func @transform_5(%arg0: i32, %arg1: i32) -> (i32, i32) {
    %c0_i32 = arith.constant 0 : i32
    %c0_i32_0 = arith.constant 0 : i32
    %c0_i32_1 = arith.constant 0 : i32
    return %c0_i32, %c0_i32_0 : i32, i32
  }
  func.func @transform_6(%arg0: i32, %arg1: i32) -> (i32, i32) {
    %c0_i32 = arith.constant 0 : i32
    %c0_i32_0 = arith.constant 0 : i32
    %c0_i32_1 = arith.constant 0 : i32
    return %c0_i32, %c0_i32_0 : i32, i32
  }
  func.func @transform_7(%arg0: i32, %arg1: i32) -> (i32, i32) {
    %c0_i32 = arith.constant 0 : i32
    %c0_i32_0 = arith.constant 0 : i32
    return %arg0, %c0_i32 : i32, i32
  }
}

</mosaic_0001>

<bundles_post_ra>
// kernel: tpu_custom_call.1
= control target key start
LH: loop header
LB: loop body
LE: loop exit
PB: predicated region body
PF: predicated region fallthrough
CT: control target
= control target key end

     0   :  { %12 = vsyncpa [#allocation4], 0  ;;  %s762_s0 = inlined_call_operand.hbm [shape: f32[16,128], index: 0, kind: input, shape index: {}]   ;;  %s763_s1 = inlined_call_operand.hbm [shape: f32[128,128], index: 1, kind: input, shape index: {}]   ;;  %s764_s2 = inlined_call_operand.vmem [shape: f32[1,128], index: 2, kind: input, shape index: {}]   ;;  %s765_s3 = inlined_call_operand.hbm [shape: f32[128,128], index: 3, kind: input, shape index: {}]   ;;  %s766_s4 = inlined_call_operand.vmem [shape: f32[1,128], index: 4, kind: input, shape index: {}]   ;;  %s767_s5 = inlined_call_operand.vmem [shape: f32[1,128], index: 5, kind: input, shape index: {}]   ;;  %s768_s6 = inlined_call_operand.vmem [shape: f32[1,128], index: 6, kind: input, shape index: {}]   ;;  %s769_s7 = inlined_call_operand.hbm [shape: f32[16,128], index: 7, kind: output, shape index: {}]  }
   0x1   :  { %13 = vsyncpa [#allocation7], 0 }
   0x2   :  { %14 = vsyncpa [#allocation5], 0  ;;  %s633_s24 = smov [#allocation6]   ;;  %s634_s26 = smov [#allocation3]  }
   0x3   :  { %s32_s25 = sshll.u32 %s633_s24, 4  ;;  %s20_s27 = sshll.u32 %s634_s26, 4  ;;  %s33_s25 = int_to_ptr.vmem [resolvable:$true] %s32_s25  ;;  %s679_s27 = int_to_ptr.vmem [resolvable:$true] %s20_s27 }
   0x4   :  { %s539_s30 = scalar_lea.hbm %s763_s1, 2048 }
   0x5   :  { %p540_p0 = scmp.ne.s32.totalorder %s763_s1, %s539_s30  ;;  %p543_p1 = scmp.lt.u32.totalorder %s539_s30, %s763_s1 }
   0x7   :  { %p545_p2 = pnand %p543_p1, %p540_p0 }
   0x9   :  { %548 = shalt.err (!%p545_p2)
}
   0xa   :  { %s549_s12 = scalar_lea.vmem %s33_s25, 2048  ;;  %p554_p4 = scmp.lt.s32.totalorder %s33_s25, %s33_s25 }
   0xb   :  { %p550_p3 = scmp.ne.s32.totalorder %s33_s25, %s549_s12  ;;  %p555_p5 = scmp.lt.s32.totalorder %s549_s12, %s549_s12 }
   0xd   :  { %p556_p6 = por %p555_p5, %p554_p4 }
   0xf   :  { %p557_p7 = pnand %p556_p6, %p550_p3 }
  0x11   :  { %560 = shalt.err (!%p557_p7)
}
  0x12   :  { %s635_s13 = smov 128   ;;  %s636_s14 = smov 8  }
  0x13   :  { %38 = dma.hbm_to_vmem [thread:$0]  %s763_s1, 2048, %s33_s25, [#allocation7], %s635_s13, %s635_s13, %s636_s14  }
  0x14   :  { %s561_s19 = scalar_lea.hbm %s762_s0, 256 }
  0x15   :  { %p562_p8 = scmp.ne.s32.totalorder %s762_s0, %s561_s19  ;;  %p565_p9 = scmp.lt.u32.totalorder %s561_s19, %s762_s0 }
  0x17   :  { %p567_p10 = pnand %p565_p9, %p562_p8 }
  0x19   :  { %570 = shalt.err (!%p567_p10)
}
  0x1a   :  { %s571_s24 = scalar_lea.vmem %s679_s27, 256  ;;  %p576_p12 = scmp.lt.s32.totalorder %s679_s27, %s679_s27 }
  0x1b   :  { %p572_p11 = scmp.ne.s32.totalorder %s679_s27, %s571_s24  ;;  %p577_p13 = scmp.lt.s32.totalorder %s571_s24, %s571_s24 }
  0x1d   :  { %p578_p0 = por %p577_p13, %p576_p12 }
  0x1f   :  { %p579_p1 = pnand %p578_p0, %p572_p11 }
  0x21   :  { %582 = shalt.err (!%p579_p1)
}
  0x22   :  { %26 = dma.hbm_to_vmem [thread:$0]  %s762_s0, 256, %s679_s27, [#allocation4], %s635_s13, %s635_s13, %s636_s14  }
  0x23   :  { %s637_s26 = smov [#allocation8]   ;;  %s583_s8 = scalar_lea.hbm %s765_s3, 2048 }
  0x24   :  { %s46_s28 = sshll.u32 %s637_s26, 4  ;;  %p584_p2 = scmp.ne.s32.totalorder %s765_s3, %s583_s8  ;;  %s47_s28 = int_to_ptr.vmem [resolvable:$true] %s46_s28 }
  0x25   :  { %p587_p3 = scmp.lt.u32.totalorder %s583_s8, %s765_s3 }
  0x27   :  { %p589_p4 = pnand %p587_p3, %p584_p2 }
  0x29   :  { %592 = shalt.err (!%p589_p4)
}
  0x2a   :  { %s593_s15 = scalar_lea.vmem %s47_s28, 2048  ;;  %p598_p6 = scmp.lt.s32.totalorder %s47_s28, %s47_s28 }
  0x2b   :  { %p594_p5 = scmp.ne.s32.totalorder %s47_s28, %s593_s15  ;;  %p599_p7 = scmp.lt.s32.totalorder %s593_s15, %s593_s15 }
  0x2d   :  { %p600_p8 = por %p599_p7, %p598_p6 }
  0x2f   :  { %p601_p9 = pnand %p600_p8, %p594_p5 }
  0x31   :  { %604 = shalt.err (!%p601_p9)
}
  0x32   :  { %52 = dma.hbm_to_vmem [thread:$0]  %s765_s3, 2048, %s47_s28, [#allocation7], %s635_s13, %s635_s13, %s636_s14  }
  0x33   :  { %627 = dma.done.wait [#allocation4], 256  }
  0x34   :  { %628 = vsyncadd [#allocation4], 4294967040 }
  0x35   :  { %629 = dma.done.wait [#allocation7], 4096  }
  0x36   :  { %630 = vsyncadd [#allocation7], 4294963200  ;;  %v76_v0 = vld [vmem:[#allocation6] sm:$0xff]  ;;  %v77_v1 = vld [vmem:[#allocation6 + $0x8] sm:$0xff]  ;;  %s638_s21 = smov [#allocation9]  }
  0x37   :  { %v78_v2 = vld [vmem:[#allocation6 + $0x10] sm:$0xff]  ;;  %v465_v3 = vpack.c.bf16 %v77_v1, %v76_v0  ;;  %v79_v4 = vld [vmem:[#allocation6 + $0x18] sm:$0xff]  ;;  %v80_v6 = vld [vmem:[#allocation6 + $0x20] sm:$0xff]  ;;  %s342_s22 = sshll.u32 %s638_s21, 4  ;;  %s343_s22 = int_to_ptr.vmem [resolvable:$true] %s342_s22 }
  0x38   :  { %v469_v5 = vpack.c.bf16 %v79_v4, %v78_v2  ;;  %v81_v7 = vld [vmem:[#allocation6 + $0x28] sm:$0xff]  ;;  %v82_v9 = vld [vmem:[#allocation6 + $0x30] sm:$0xff]  ;;  %v83_v10 = vld [vmem:[#allocation6 + $0x38] sm:$0xff]  ;;  %s605_s23 = scalar_lea.vmem %s343_s22, 256  ;;  %p610_p11 = scmp.lt.s32.totalorder %s343_s22, %s343_s22 }
  0x39   :  { %466 = vmatprep.subr.bf16.mxu0 %v465_v3  ;;  %v473_v8 = vpack.c.bf16 %v81_v7, %v80_v6  ;;  %v731_v11 = vld [vmem:[#allocation3] sm:$0xff]  ;;  %v178_v12 = vld [vmem:[#allocation8] sm:$0xff]  ;;  %v179_v13 = vld [vmem:[#allocation8 + $0x8] sm:$0xff]  ;;  %v477_v20 = vpack.c.bf16 %v83_v10, %v82_v9  ;;  %p606_p10 = scmp.ne.s32.totalorder %s343_s22, %s605_s23  ;;  %p611_p12 = scmp.lt.s32.totalorder %s605_s23, %s605_s23 }
  0x3a   :  { %468 = vmatpush3.bf16.msra.mxu0 %v465_v3  ;;  %427 = vmatprep.mubr.f32.mxu0 %v731_v11  ;;  %v180_v14 = vld [vmem:[#allocation8 + $0x10] sm:$0xff]  ;;  %v497_v15 = vpack.c.bf16 %v179_v13, %v178_v12  ;;  %v181_v16 = vld [vmem:[#allocation8 + $0x18] sm:$0xff]  ;;  %v182_v18 = vld [vmem:[#allocation8 + $0x20] sm:$0xff] }
  0x3b   :  { %470 = vmatprep.subr.bf16.mxu0 %v469_v5  ;;  %v501_v17 = vpack.c.bf16 %v181_v16, %v180_v14  ;;  %v183_v19 = vld [vmem:[#allocation8 + $0x28] sm:$0xff]  ;;  %v84_v21 = vld [vmem:[#allocation6 + $0x40] sm:$0xff]  ;;  %v184_v24 = vld [vmem:[#allocation8 + $0x30] sm:$0xff]  ;;  %p612_p13 = por %p611_p12, %p610_p11 }
  0x3c   :  { %498 = vmatprep.subr.bf16.mxu1 %v497_v15  ;;  %v85_v22 = vld [vmem:[#allocation6 + $0x48] sm:$0xff]  ;;  %v505_v23 = vpack.c.bf16 %v183_v19, %v182_v18  ;;  %v185_v25 = vld [vmem:[#allocation8 + $0x38] sm:$0xff]  ;;  %v86_v27 = vld [vmem:[#allocation6 + $0x50] sm:$0xff] }
  0x3d   :  { %500 = vmatpush3.bf16.msra.mxu1 %v497_v15  ;;  %v481_v26 = vpack.c.bf16 %v85_v22, %v84_v21  ;;  %v87_v28 = vld [vmem:[#allocation6 + $0x58] sm:$0xff]  ;;  %v509_v29 = vpack.c.bf16 %v185_v25, %v184_v24  ;;  %v186_v30 = vld [vmem:[#allocation8 + $0x40] sm:$0xff]  ;;  %v187_v31 = vld [vmem:[#allocation8 + $0x48] sm:$0xff]  ;;  %p613_p0 = pnand %p612_p13, %p606_p10 }
  0x3e   :  { %472 = vmatpush3.bf16.msra.mxu0 %v469_v5  ;;  %502 = vmatprep.subr.bf16.mxu1 %v501_v17  ;;  %v485_v32 = vpack.c.bf16 %v87_v28, %v86_v27  ;;  %v88_v33 = vld [vmem:[#allocation6 + $0x60] sm:$0xff]  ;;  %v89_v34 = vld [vmem:[#allocation6 + $0x68] sm:$0xff]  ;;  %v513_v35 = vpack.c.bf16 %v187_v31, %v186_v30  ;;  %v188_v36 = vld [vmem:[#allocation8 + $0x50] sm:$0xff] }
  0x3f   :  { %474 = vmatprep.subr.bf16.mxu0 %v473_v8  ;;  %v189_v37 = vld [vmem:[#allocation8 + $0x58] sm:$0xff]  ;;  %v489_v38 = vpack.c.bf16 %v89_v34, %v88_v33  ;;  %v90_v39 = vld [vmem:[#allocation6 + $0x70] sm:$0xff]  ;;  %v190_v42 = vld [vmem:[#allocation8 + $0x60] sm:$0xff] }
  0x40   :  { %v91_v40 = vld [vmem:[#allocation6 + $0x78] sm:$0xff]  ;;  %v517_v41 = vpack.c.bf16 %v189_v37, %v188_v36  ;;  %v191_v43 = vld [vmem:[#allocation8 + $0x68] sm:$0xff]  ;;  %v192_v47 = vld [vmem:[#allocation8 + $0x70] sm:$0xff] }
  0x41   :  { %504 = vmatpush3.bf16.msra.mxu1 %v501_v17  ;;  %v493_v44 = vpack.c.bf16 %v91_v40, %v90_v39  ;;  %v521_v45 = vpack.c.bf16 %v191_v43, %v190_v42  ;;  %v75_v46 = vld [vmem:[#allocation3 + $0x8] sm:$0xff]  ;;  %v355_v50 = vld [vmem:[%s764_s2] ss:$0 sm:$0xff] }
  0x42   :  { %476 = vmatpush3.bf16.msra.mxu0 %v473_v8  ;;  %506 = vmatprep.subr.bf16.mxu1 %v505_v23  ;;  %v193_v48 = vld [vmem:[#allocation8 + $0x78] sm:$0xff]  ;;  %v356_v57 = vld [vmem:[%s766_s4] ss:$0 sm:$0xff] }
  0x43   :  { %478 = vmatprep.subr.bf16.mxu0 %v477_v20  ;;  %v525_v49 = vpack.c.bf16 %v193_v48, %v192_v47  ;;  %v357_v21 = vld [vmem:[%s767_s5] ss:$0 sm:$0xff] }
  0x45   :  { %508 = vmatpush3.bf16.msra.mxu1 %v505_v23  ;;  %v358_v23 = vld [vmem:[%s768_s6] ss:$0 sm:$0xff] }
  0x46   :  { %480 = vmatpush3.bf16.msra.mxu0 %v477_v20  ;;  %510 = vmatprep.subr.bf16.mxu1 %v509_v29 }
  0x47   :  { %482 = vmatprep.subr.bf16.mxu0 %v481_v26 }
  0x49   :  { %512 = vmatpush3.bf16.msra.mxu1 %v509_v29 }
  0x4a   :  { %484 = vmatpush3.bf16.msra.mxu0 %v481_v26  ;;  %514 = vmatprep.subr.bf16.mxu1 %v513_v35 }
  0x4b   :  { %486 = vmatprep.subr.bf16.mxu0 %v485_v32 }
  0x4d   :  { %516 = vmatpush3.bf16.msra.mxu1 %v513_v35 }
  0x4e   :  { %488 = vmatpush3.bf16.msra.mxu0 %v485_v32  ;;  %518 = vmatprep.subr.bf16.mxu1 %v517_v41 }
  0x4f   :  { %490 = vmatprep.subr.bf16.mxu0 %v489_v38 }
  0x51   :  { %520 = vmatpush3.bf16.msra.mxu1 %v517_v41 }
  0x52   :  { %492 = vmatpush3.bf16.msra.mxu0 %v489_v38  ;;  %522 = vmatprep.subr.bf16.mxu1 %v521_v45 }
  0x53   :  { %494 = vmatprep.subr.bf16.mxu0 %v493_v44 }
  0x55   :  { %524 = vmatpush3.bf16.msra.mxu1 %v521_v45 }
  0x56   :  { %496 = vmatpush3.bf16.msra.mxu0 %v493_v44  ;;  %526 = vmatprep.subr.bf16.mxu1 %v525_v49 }
  0x59   :  { %428 = vmatmul.mubr.f32.vlgmr.msra.gmra.mrb[0].mxu0 %v75_v46  ;;  %528 = vmatpush3.bf16.msra.mxu1 %v525_v49 }
 0x12c   :  { %v429_v51 = vpop.f32.mrb[0].mxu0 }
 0x12d   :  { %v171_v52 = vadd.f32 %v429_v51, %v355_v50  ;;  %v165_v53 = vpop.f32.mrb[1].mxu0 }
 0x12e   :  { %v166_v54 = vadd.f32 %v355_v50, %v165_v53 }
 0x12f   :  { %v175_v56 = vmax.f32 %v171_v52, 0.0 }
 0x130   :  { %v174_v55 = vmax.f32 %v166_v54, 0.0 }
 0x132   :  { %462 = vmatprep.mubr.f32.mxu1 %v174_v55 }
 0x133   :  { %463 = vmatmul.mubr.f32.vlgmr.msra.gmra.mrb[0].mxu1 %v175_v56 }
 0x206   :  { %v464_v58 = vpop.f32.mrb[0].mxu1 }
 0x207   :  { %v260_v59 = vpop.f32.mrb[1].mxu1  ;;  %v286_v61 = vadd.f32 %v464_v58, %v356_v57 }
 0x208   :  { %v285_v60 = vadd.f32 %v356_v57, %v260_v59 }
 0x209   :  { %v288_v63 = vadd.f32 %v286_v61, %v75_v46 }
 0x20a   :  { %v287_v62 = vadd.f32 %v285_v60, %v731_v11 }
 0x20c   :  { %289 = vadd.xlane.f32.xlu0 %v287_v62 }
 0x210   :  { %291 = vadd.xlane.f32.xlu0 %v288_v63 }
 0x299   :  { %v290_v0 = vpop.xlane.xlu0 %289 }
 0x29a   :  { %v293_v1 = vmul.f32 0.03125, %v290_v0 }
 0x29c   :  { %v295_v2 = vsub.f32 %v287_v62, %v293_v1  ;;  %v303_v8 = vmul.f32 %v293_v1, %v293_v1 }
 0x29d   :  { %v292_v3 = vpop.xlane.xlu0 %291 }
 0x29e   :  { %v294_v4 = vmul.f32 0.03125, %v292_v3  ;;  %v297_v5 = vmul.f32 %v295_v2, %v295_v2  ;;  %v305_v10 = vmul.f32 96.0, %v303_v8 }
 0x2a0   :  { %v296_v6 = vsub.f32 %v288_v63, %v294_v4  ;;  %299 = vadd.xlane.f32.xlu1 %v297_v5  ;;  %v304_v9 = vmul.f32 %v294_v4, %v294_v4 }
 0x2a2   :  { %v298_v7 = vmul.f32 %v296_v6, %v296_v6  ;;  %v306_v14 = vmul.f32 96.0, %v304_v9 }
 0x2a4   :  { %301 = vadd.xlane.f32.xlu1 %v298_v7 }
 0x32d   :  { %v300_v12 = vpop.xlane.xlu1 %299 }
 0x32e   :  { %v307_v13 = vsub.f32 %v300_v12, %v305_v10 }
 0x330   :  { %v309_v11 = vmul.f32 0.03125, %v307_v13 }
 0x331   :  { %v302_v15 = vpop.xlane.xlu1 %301 }
 0x332   :  { %v311_v16 = vadd.f32 1e-05, %v309_v11  ;;  %v308_v17 = vsub.f32 %v302_v15, %v306_v14 }
 0x334   :  { %535 = vrsqrt.f32 %v311_v16  ;;  %v310_v18 = vmul.f32 0.03125, %v308_v17 }
 0x336   :  { %v312_v19 = vadd.f32 1e-05, %v310_v18 }
 0x338   :  { %537 = vrsqrt.f32 %v312_v19 }
 0x33e   :  { %v536_v20 = vpop.eup %535 }
 0x33f   :  { %v315_v22 = vmul.f32 %v536_v20, %v295_v2 }
 0x341   :  { %v324_v24 = vmul.f32 %v357_v21, %v315_v22 }
 0x342   :  { %v538_v25 = vpop.eup %537 }
 0x343   :  { %v316_v26 = vmul.f32 %v538_v25, %v296_v6  ;;  %v333_v27 = vadd.f32 %v358_v23, %v324_v24 }
 0x345   :  { %v325_v28 = vmul.f32 %v357_v21, %v316_v26  ;;  %335 = vst [vmem:[#allocation9] sm:$0xff] %v333_v27 }
 0x347   :  { %v334_v29 = vadd.f32 %v358_v23, %v325_v28 }
 0x349   :  { %336 = vst [vmem:[#allocation9 + $0x8] sm:$0xff] %v334_v29 }
 0x34a   :  { %616 = shalt.err (!%p613_p0)
}
 0x34b   :  { %s617_s24 = scalar_lea.hbm %s769_s7, 256 }
 0x34c   :  { %p618_p1 = scmp.ne.s32.totalorder %s769_s7, %s617_s24  ;;  %p621_p2 = scmp.lt.u32.totalorder %s617_s24, %s769_s7 }
 0x34e   :  { %p623_p3 = pnand %p621_p2, %p618_p1 }
 0x350   :  { %626 = shalt.err (!%p623_p3)
}
 0x351   :  { %348 = dma.vmem_to_hbm [thread:$0]  %s343_s22, 256, %s769_s7, [#allocation5], %s635_s13, %s635_s13, %s636_s14  }
 0x352   :  { %631 = dma.done.wait [#allocation5], 256  }
 0x353   :  { %632 = vsyncadd [#allocation5], 4294967040 }
 0x354   :  { %352 = vsyncpa [#allocation4], 1 }
 0x355   :  { %353 = vsyncpa [#allocation7], 1 }
 0x356   :  { %354 = vsyncpa [#allocation5], 1 }

// kernel: tpu_custom_call.1
= control target key start
LH: loop header
LB: loop body
LE: loop exit
PB: predicated region body
PF: predicated region fallthrough
CT: control target
= control target key end

     0   :  { %12 = vsyncpa [#allocation4], 0  ;;  %s762_s0 = inlined_call_operand.hbm [shape: f32[16,128], index: 0, kind: input, shape index: {}]   ;;  %s763_s1 = inlined_call_operand.hbm [shape: f32[128,128], index: 1, kind: input, shape index: {}]   ;;  %s764_s2 = inlined_call_operand.vmem [shape: f32[1,128], index: 2, kind: input, shape index: {}]   ;;  %s765_s3 = inlined_call_operand.hbm [shape: f32[128,128], index: 3, kind: input, shape index: {}]   ;;  %s766_s4 = inlined_call_operand.vmem [shape: f32[1,128], index: 4, kind: input, shape index: {}]   ;;  %s767_s5 = inlined_call_operand.vmem [shape: f32[1,128], index: 5, kind: input, shape index: {}]   ;;  %s768_s6 = inlined_call_operand.vmem [shape: f32[1,128], index: 6, kind: input, shape index: {}]   ;;  %s769_s7 = inlined_call_operand.hbm [shape: f32[16,128], index: 7, kind: output, shape index: {}]  }
   0x1   :  { %13 = vsyncpa [#allocation7], 0 }
   0x2   :  { %14 = vsyncpa [#allocation5], 0  ;;  %s633_s24 = smov [#allocation6]   ;;  %s634_s26 = smov [#allocation3]  }
   0x3   :  { %s32_s25 = sshll.u32 %s633_s24, 4  ;;  %s20_s27 = sshll.u32 %s634_s26, 4  ;;  %s33_s25 = int_to_ptr.vmem [resolvable:$true] %s32_s25  ;;  %s679_s27 = int_to_ptr.vmem [resolvable:$true] %s20_s27 }
   0x4   :  { %s539_s30 = scalar_lea.hbm %s763_s1, 2048 }
   0x5   :  { %p540_p0 = scmp.ne.s32.totalorder %s763_s1, %s539_s30  ;;  %p543_p1 = scmp.lt.u32.totalorder %s539_s30, %s763_s1 }
   0x7   :  { %p545_p2 = pnand %p543_p1, %p540_p0 }
   0x9   :  { %548 = shalt.err (!%p545_p2)
}
   0xa   :  { %s549_s12 = scalar_lea.vmem %s33_s25, 2048  ;;  %p554_p4 = scmp.lt.s32.totalorder %s33_s25, %s33_s25 }
   0xb   :  { %p550_p3 = scmp.ne.s32.totalorder %s33_s25, %s549_s12  ;;  %p555_p5 = scmp.lt.s32.totalorder %s549_s12, %s549_s12 }
   0xd   :  { %p556_p6 = por %p555_p5, %p554_p4 }
   0xf   :  { %p557_p7 = pnand %p556_p6, %p550_p3 }
  0x11   :  { %560 = shalt.err (!%p557_p7)
}
  0x12   :  { %s635_s13 = smov 128   ;;  %s636_s14 = smov 8  }
  0x13   :  { %38 = dma.hbm_to_vmem [thread:$0]  %s763_s1, 2048, %s33_s25, [#allocation7], %s635_s13, %s635_s13, %s636_s14  }
  0x14   :  { %s561_s19 = scalar_lea.hbm %s762_s0, 256 }
  0x15   :  { %p562_p8 = scmp.ne.s32.totalorder %s762_s0, %s561_s19  ;;  %p565_p9 = scmp.lt.u32.totalorder %s561_s19, %s762_s0 }
  0x17   :  { %p567_p10 = pnand %p565_p9, %p562_p8 }
  0x19   :  { %570 = shalt.err (!%p567_p10)
}
  0x1a   :  { %s571_s24 = scalar_lea.vmem %s679_s27, 256  ;;  %p576_p12 = scmp.lt.s32.totalorder %s679_s27, %s679_s27 }
  0x1b   :  { %p572_p11 = scmp.ne.s32.totalorder %s679_s27, %s571_s24  ;;  %p577_p13 = scmp.lt.s32.totalorder %s571_s24, %s571_s24 }
  0x1d   :  { %p578_p0 = por %p577_p13, %p576_p12 }
  0x1f   :  { %p579_p1 = pnand %p578_p0, %p572_p11 }
  0x21   :  { %582 = shalt.err (!%p579_p1)
}
  0x22   :  { %26 = dma.hbm_to_vmem [thread:$0]  %s762_s0, 256, %s679_s27, [#allocation4], %s635_s13, %s635_s13, %s636_s14  }
  0x23   :  { %s637_s26 = smov [#allocation8]   ;;  %s583_s8 = scalar_lea.hbm %s765_s3, 2048 }
  0x24   :  { %s46_s28 = sshll.u32 %s637_s26, 4  ;;  %p584_p2 = scmp.ne.s32.totalorder %s765_s3, %s583_s8  ;;  %s47_s28 = int_to_ptr.vmem [resolvable:$true] %s46_s28 }
  0x25   :  { %p587_p3 = scmp.lt.u32.totalorder %s583_s8, %s765_s3 }
  0x27   :  { %p589_p4 = pnand %p587_p3, %p584_p2 }
  0x29   :  { %592 = shalt.err (!%p589_p4)
}
  0x2a   :  { %s593_s15 = scalar_lea.vmem %s47_s28, 2048  ;;  %p598_p6 = scmp.lt.s32.totalorder %s47_s28, %s47_s28 }
  0x2b   :  { %p594_p5 = scmp.ne.s32.totalorder %s47_s28, %s593_s15  ;;  %p599_p7 = scmp.lt.s32.totalorder %s593_s15, %s593_s15 }
  0x2d   :  { %p600_p8 = por %p599_p7, %p598_p6 }
  0x2f   :  { %p601_p9 = pnand %p600_p8, %p594_p5 }
  0x31   :  { %604 = shalt.err (!%p601_p9)
}
  0x32   :  { %52 = dma.hbm_to_vmem [thread:$0]  %s765_s3, 2048, %s47_s28, [#allocation7], %s635_s13, %s635_s13, %s636_s14  }
  0x33   :  { %627 = dma.done.wait [#allocation4], 256  }
  0x34   :  { %628 = vsyncadd [#allocation4], 4294967040 }
  0x35   :  { %629 = dma.done.wait [#allocation7], 4096  }
  0x36   :  { %630 = vsyncadd [#allocation7], 4294963200  ;;  %v76_v0 = vld [vmem:[#allocation6] sm:$0xff]  ;;  %v77_v1 = vld [vmem:[#allocation6 + $0x8] sm:$0xff]  ;;  %s638_s21 = smov [#allocation9]  }
  0x37   :  { %v78_v2 = vld [vmem:[#allocation6 + $0x10] sm:$0xff]  ;;  %v465_v3 = vpack.c.bf16 %v77_v1, %v76_v0  ;;  %v79_v4 = vld [vmem:[#allocation6 + $0x18] sm:$0xff]  ;;  %v80_v6 = vld [vmem:[#allocation6 + $0x20] sm:$0xff]  ;;  %s342_s22 = sshll.u32 %s638_s21, 4  ;;  %s343_s22 = int_to_ptr.vmem [resolvable:$true] %s342_s22 }
  0x38   :  { %v469_v5 = vpack.c.bf16 %v79_v4, %v78_v2  ;;  %v81_v7 = vld [vmem:[#allocation6 + $0x28] sm:$0xff]  ;;  %v82_v9 = vld [vmem:[#allocation6 + $0x30] sm:$0xff]  ;;  %v83_v10 = vld [vmem:[#allocation6 + $0x38] sm:$0xff]  ;;  %s605_s23 = scalar_lea.vmem %s343_s22, 256  ;;  %p610_p11 = scmp.lt.s32.totalorder %s343_s22, %s343_s22 }
  0x39   :  { %466 = vmatprep.subr.bf16.mxu0 %v465_v3  ;;  %v473_v8 = vpack.c.bf16 %v81_v7, %v80_v6  ;;  %v731_v11 = vld [vmem:[#allocation3] sm:$0xff]  ;;  %v178_v12 = vld [vmem:[#allocation8] sm:$0xff]  ;;  %v179_v13 = vld [vmem:[#allocation8 + $0x8] sm:$0xff]  ;;  %v477_v20 = vpack.c.bf16 %v83_v10, %v82_v9  ;;  %p606_p10 = scmp.ne.s32.totalorder %s343_s22, %s605_s23  ;;  %p611_p12 = scmp.lt.s32.totalorder %s605_s23, %s605_s23 }
  0x3a   :  { %468 = vmatpush3.bf16.msra.mxu0 %v465_v3  ;;  %427 = vmatprep.mubr.f32.mxu0 %v731_v11  ;;  %v180_v14 = vld [vmem:[#allocation8 + $0x10] sm:$0xff]  ;;  %v497_v15 = vpack.c.bf16 %v179_v13, %v178_v12  ;;  %v181_v16 = vld [vmem:[#allocation8 + $0x18] sm:$0xff]  ;;  %v182_v18 = vld [vmem:[#allocation8 + $0x20] sm:$0xff] }
  0x3b   :  { %470 = vmatprep.subr.bf16.mxu0 %v469_v5  ;;  %v501_v17 = vpack.c.bf16 %v181_v16, %v180_v14  ;;  %v183_v19 = vld [vmem:[#allocation8 + $0x28] sm:$0xff]  ;;  %v84_v21 = vld [vmem:[#allocation6 + $0x40] sm:$0xff]  ;;  %v184_v24 = vld [vmem:[#allocation8 + $0x30] sm:$0xff]  ;;  %p612_p13 = por %p611_p12, %p610_p11 }
  0x3c   :  { %498 = vmatprep.subr.bf16.mxu1 %v497_v15  ;;  %v85_v22 = vld [vmem:[#allocation6 + $0x48] sm:$0xff]  ;;  %v505_v23 = vpack.c.bf16 %v183_v19, %v182_v18  ;;  %v185_v25 = vld [vmem:[#allocation8 + $0x38] sm:$0xff]  ;;  %v86_v27 = vld [vmem:[#allocation6 + $0x50] sm:$0xff] }
  0x3d   :  { %500 = vmatpush3.bf16.msra.mxu1 %v497_v15  ;;  %v481_v26 = vpack.c.bf16 %v85_v22, %v84_v21  ;;  %v87_v28 = vld [vmem:[#allocation6 + $0x58] sm:$0xff]  ;;  %v509_v29 = vpack.c.bf16 %v185_v25, %v184_v24  ;;  %v186_v30 = vld [vmem:[#allocation8 + $0x40] sm:$0xff]  ;;  %v187_v31 = vld [vmem:[#allocation8 + $0x48] sm:$0xff]  ;;  %p613_p0 = pnand %p612_p13, %p606_p10 }
  0x3e   :  { %472 = vmatpush3.bf16.msra.mxu0 %v469_v5  ;;  %502 = vmatprep.subr.bf16.mxu1 %v501_v17  ;;  %v485_v32 = vpack.c.bf16 %v87_v28, %v86_v27  ;;  %v88_v33 = vld [vmem:[#allocation6 + $0x60] sm:$0xff]  ;;  %v89_v34 = vld [vmem:[#allocation6 + $0x68] sm:$0xff]  ;;  %v513_v35 = vpack.c.bf16 %v187_v31, %v186_v30  ;;  %v188_v36 = vld [vmem:[#allocation8 + $0x50] sm:$0xff] }
  0x3f   :  { %474 = vmatprep.subr.bf16.mxu0 %v473_v8  ;;  %v189_v37 = vld [vmem:[#allocation8 + $0x58] sm:$0xff]  ;;  %v489_v38 = vpack.c.bf16 %v89_v34, %v88_v33  ;;  %v90_v39 = vld [vmem:[#allocation6 + $0x70] sm:$0xff]  ;;  %v190_v42 = vld [vmem:[#allocation8 + $0x60] sm:$0xff] }
  0x40   :  { %v91_v40 = vld [vmem:[#allocation6 + $0x78] sm:$0xff]  ;;  %v517_v41 = vpack.c.bf16 %v189_v37, %v188_v36  ;;  %v191_v43 = vld [vmem:[#allocation8 + $0x68] sm:$0xff]  ;;  %v192_v47 = vld [vmem:[#allocation8 + $0x70] sm:$0xff] }
  0x41   :  { %504 = vmatpush3.bf16.msra.mxu1 %v501_v17  ;;  %v493_v44 = vpack.c.bf16 %v91_v40, %v90_v39  ;;  %v521_v45 = vpack.c.bf16 %v191_v43, %v190_v42  ;;  %v75_v46 = vld [vmem:[#allocation3 + $0x8] sm:$0xff]  ;;  %v355_v50 = vld [vmem:[%s764_s2] ss:$0 sm:$0xff] }
  0x42   :  { %476 = vmatpush3.bf16.msra.mxu0 %v473_v8  ;;  %506 = vmatprep.subr.bf16.mxu1 %v505_v23  ;;  %v193_v48 = vld [vmem:[#allocation8 + $0x78] sm:$0xff]  ;;  %v356_v57 = vld [vmem:[%s766_s4] ss:$0 sm:$0xff] }
  0x43   :  { %478 = vmatprep.subr.bf16.mxu0 %v477_v20  ;;  %v525_v49 = vpack.c.bf16 %v193_v48, %v192_v47  ;;  %v357_v21 = vld [vmem:[%s767_s5] ss:$0 sm:$0xff] }
  0x45   :  { %508 = vmatpush3.bf16.msra.mxu1 %v505_v23  ;;  %v358_v23 = vld [vmem:[%s768_s6] ss:$0 sm:$0xff] }
  0x46   :  { %480 = vmatpush3.bf16.msra.mxu0 %v477_v20  ;;  %510 = vmatprep.subr.bf16.mxu1 %v509_v29 }
  0x47   :  { %482 = vmatprep.subr.bf16.mxu0 %v481_v26 }
  0x49   :  { %512 = vmatpush3.bf16.msra.mxu1 %v509_v29 }
  0x4a   :  { %484 = vmatpush3.bf16.msra.mxu0 %v481_v26  ;;  %514 = vmatprep.subr.bf16.mxu1 %v513_v35 }
  0x4b   :  { %486 = vmatprep.subr.bf16.mxu0 %v485_v32 }
  0x4d   :  { %516 = vmatpush3.bf16.msra.mxu1 %v513_v35 }
  0x4e   :  { %488 = vmatpush3.bf16.msra.mxu0 %v485_v32  ;;  %518 = vmatprep.subr.bf16.mxu1 %v517_v41 }
  0x4f   :  { %490 = vmatprep.subr.bf16.mxu0 %v489_v38 }
  0x51   :  { %520 = vmatpush3.bf16.msra.mxu1 %v517_v41 }
  0x52   :  { %492 = vmatpush3.bf16.msra.mxu0 %v489_v38  ;;  %522 = vmatprep.subr.bf16.mxu1 %v521_v45 }
  0x53   :  { %494 = vmatprep.subr.bf16.mxu0 %v493_v44 }
  0x55   :  { %524 = vmatpush3.bf16.msra.mxu1 %v521_v45 }
  0x56   :  { %496 = vmatpush3.bf16.msra.mxu0 %v493_v44  ;;  %526 = vmatprep.subr.bf16.mxu1 %v525_v49 }
  0x59   :  { %428 = vmatmul.mubr.f32.vlgmr.msra.gmra.mrb[0].mxu0 %v75_v46  ;;  %528 = vmatpush3.bf16.msra.mxu1 %v525_v49 }
 0x12c   :  { %v429_v51 = vpop.f32.mrb[0].mxu0 }
 0x12d   :  { %v171_v52 = vadd.f32 %v429_v51, %v355_v50  ;;  %v165_v53 = vpop.f32.mrb[1].mxu0 }
 0x12e   :  { %v166_v54 = vadd.f32 %v355_v50, %v165_v53 }
 0x12f   :  { %v175_v56 = vmax.f32 %v171_v52, 0.0 }
 0x130   :  { %v174_v55 = vmax.f32 %v166_v54, 0.0 }
 0x132   :  { %462 = vmatprep.mubr.f32.mxu1 %v174_v55 }
 0x133   :  { %463 = vmatmul.mubr.f32.vlgmr.msra.gmra.mrb[0].mxu1 %v175_v56 }
 0x206   :  { %v464_v58 = vpop.f32.mrb[0].mxu1 }
 0x207   :  { %v260_v59 = vpop.f32.mrb[1].mxu1  ;;  %v286_v61 = vadd.f32 %v464_v58, %v356_v57 }
 0x208   :  { %v285_v60 = vadd.f32 %v356_v57, %v260_v59 }
 0x209   :  { %v288_v63 = vadd.f32 %v286_v61, %v75_v46 }
 0x20a   :  { %v287_v62 = vadd.f32 %v285_v60, %v731_v11 }
 0x20c   :  { %289 = vadd.xlane.f32.xlu0 %v287_v62 }
 0x210   :  { %291 = vadd.xlane.f32.xlu0 %v288_v63 }
 0x299   :  { %v290_v0 = vpop.xlane.xlu0 %289 }
 0x29a   :  { %v293_v1 = vmul.f32 0.03125, %v290_v0 }
 0x29c   :  { %v295_v2 = vsub.f32 %v287_v62, %v293_v1  ;;  %v303_v8 = vmul.f32 %v293_v1, %v293_v1 }
 0x29d   :  { %v292_v3 = vpop.xlane.xlu0 %291 }
 0x29e   :  { %v294_v4 = vmul.f32 0.03125, %v292_v3  ;;  %v297_v5 = vmul.f32 %v295_v2, %v295_v2  ;;  %v305_v10 = vmul.f32 96.0, %v303_v8 }
 0x2a0   :  { %v296_v6 = vsub.f32 %v288_v63, %v294_v4  ;;  %299 = vadd.xlane.f32.xlu1 %v297_v5  ;;  %v304_v9 = vmul.f32 %v294_v4, %v294_v4 }
 0x2a2   :  { %v298_v7 = vmul.f32 %v296_v6, %v296_v6  ;;  %v306_v14 = vmul.f32 96.0, %v304_v9 }
 0x2a4   :  { %301 = vadd.xlane.f32.xlu1 %v298_v7 }
 0x32d   :  { %v300_v12 = vpop.xlane.xlu1 %299 }
 0x32e   :  { %v307_v13 = vsub.f32 %v300_v12, %v305_v10 }
 0x330   :  { %v309_v11 = vmul.f32 0.03125, %v307_v13 }
 0x331   :  { %v302_v15 = vpop.xlane.xlu1 %301 }
 0x332   :  { %v311_v16 = vadd.f32 1e-05, %v309_v11  ;;  %v308_v17 = vsub.f32 %v302_v15, %v306_v14 }
 0x334   :  { %535 = vrsqrt.f32 %v311_v16  ;;  %v310_v18 = vmul.f32 0.03125, %v308_v17 }
 0x336   :  { %v312_v19 = vadd.f32 1e-05, %v310_v18 }
 0x338   :  { %537 = vrsqrt.f32 %v312_v19 }
 0x33e   :  { %v536_v20 = vpop.eup %535 }
 0x33f   :  { %v315_v22 = vmul.f32 %v536_v20, %v295_v2 }
 0x341   :  { %v324_v24 = vmul.f32 %v357_v21, %v315_v22 }
 0x342   :  { %v538_v25 = vpop.eup %537 }
 0x343   :  { %v316_v26 = vmul.f32 %v538_v25, %v296_v6  ;;  %v333_v27 = vadd.f32 %v358_v23, %v324_v24 }
 0x345   :  { %v325_v28 = vmul.f32 %v357_v21, %v316_v26  ;;  %335 = vst [vmem:[#allocation9] sm:$0xff] %v333_v27 }
 0x347   :  { %v334_v29 = vadd.f32 %v358_v23, %v325_v28 }
 0x349   :  { %336 = vst [vmem:[#allocation9 + $0x8] sm:$0xff] %v334_v29 }
 0x34a   :  { %616 = shalt.err (!%p613_p0)
}
 0x34b   :  { %s617_s24 = scalar_lea.hbm %s769_s7, 256 }
 0x34c   :  { %p618_p1 = scmp.ne.s32.totalorder %s769_s7, %s617_s24  ;;  %p621_p2 = scmp.lt.u32.totalorder %s617_s24, %s769_s7 }
 0x34e   :  { %p623_p3 = pnand %p621_p2, %p618_p1 }
 0x350   :  { %626 = shalt.err (!%p623_p3)
}
 0x351   :  { %348 = dma.vmem_to_hbm [thread:$0]  %s343_s22, 256, %s769_s7, [#allocation5], %s635_s13, %s635_s13, %s636_s14  }
 0x352   :  { %631 = dma.done.wait [#allocation5], 256  }
 0x353   :  { %632 = vsyncadd [#allocation5], 4294967040 }
 0x354   :  { %352 = vsyncpa [#allocation4], 1 }
 0x355   :  { %353 = vsyncpa [#allocation7], 1 }
 0x356   :  { %354 = vsyncpa [#allocation5], 1 }

</bundles_post_ra>
